<compile_context>
chip_gen: v7x
topology: tpu7x:2x2x1
jax: 0.10.0
libtpu: 0.0.40
codegen_flags: <defaults>
</compile_context>

<pallas_src>
import functools

import jax
import jax.numpy as jnp
from jax.experimental import pallas as pl
from jax.experimental.pallas import tpu as pltpu

EPS = 1e-5  # PyTorch BatchNorm1d default eps


# ----------------------------------------------------------------------------
# Kernel: one fused layer   (Linear  [+ ReLU + BatchNorm1d(train)])
# ----------------------------------------------------------------------------
def _layer_kernel(x_ref, w_ref, p_ref, o_ref, acc_ref, *, b_real, relu_bn):
    """grid = (n_tiles, k_tiles); K (reduction) is the last grid axis.

    x_ref : (Bp, tk)  bf16       w_ref  : (tk, tn) bf16
    p_ref : (3, tn)   f32        rows = [bias, gamma, beta]
    o_ref : (Bp, tn)  bf16/f32   acc_ref: (Bp, tn) f32 scratch accumulator
    """
    k = pl.program_id(1)

    @pl.when(k == 0)
    def _():
        acc_ref[...] = jnp.zeros_like(acc_ref)

    # MXU matmul: bf16 operands, f32 accumulation.
    acc_ref[...] += jnp.dot(x_ref[...], w_ref[...],
                            preferred_element_type=jnp.float32)

    @pl.when(k == pl.num_programs(1) - 1)
    def _():
        p = p_ref[...]                       # (3, tn) f32
        h = acc_ref[...] + p[0:1, :]         # + bias (f32)
        if relu_bn:
            h = jnp.maximum(h, 0.0)          # ReLU
            # BatchNorm1d, training mode (biased variance), over the REAL batch
            # rows only (padded rows are masked out of the statistics).
            rows = jax.lax.broadcasted_iota(jnp.int32, h.shape, 0)
            mask = (rows < b_real).astype(jnp.float32)
            hm = h * mask
            inv_b = jnp.float32(1.0 / b_real)
            mu = jnp.sum(hm, axis=0, keepdims=True) * inv_b
            ex2 = jnp.sum(hm * hm, axis=0, keepdims=True) * inv_b
            var = ex2 - mu * mu
            scale = p[1:2, :] * jax.lax.rsqrt(var + EPS)   # gamma / sqrt(var+eps)
            shift = p[2:3, :] - mu * scale                 # beta - mu*scale
            h = h * scale + shift                          # single FMA-style pass
        o_ref[...] = h.astype(o_ref.dtype)


# ----------------------------------------------------------------------------
# Per-layer pallas_call wrapper
# ----------------------------------------------------------------------------
def _round_up(v, m):
    return (v + m - 1) // m * m


def _pick_tile(dim, pref):
    """Largest multiple of 128 that divides `dim` (a multiple of 128), <= pref."""
    t = min(pref, dim)
    t -= t % 128
    t = max(t, 128)
    while dim % t:
        t -= 128
    return t


def _fused_layer(x, w, p, *, b_real, relu_bn, out_dtype, tile=512):
    Bp, K = x.shape
    Kw, N = w.shape
    assert K == Kw
    tk = _pick_tile(K, tile)
    tn = _pick_tile(N, tile)
    grid = (N // tn, K // tk)

    # Resident set: double-buffered inputs/outputs + f32 accumulator (+ slack).
    out_bytes = jnp.dtype(out_dtype).itemsize
    est = 2 * (Bp * tk * 2 + tk * tn * 2 + 3 * tn * 4 + Bp * tn * out_bytes) \
        + Bp * tn * 4
    vmem_limit = int(min(max(2 * est, 8 << 20), 48 << 20))

    kernel = functools.partial(_layer_kernel, b_real=b_real, relu_bn=relu_bn)
    return pl.pallas_call(
        kernel,
        out_shape=jax.ShapeDtypeStruct((Bp, N), out_dtype),
        grid_spec=pltpu.PrefetchScalarGridSpec(
            num_scalar_prefetch=0,
            grid=grid,
            in_specs=[
                pl.BlockSpec((Bp, tk), lambda n, k: (0, k)),   # activations
                pl.BlockSpec((tk, tn), lambda n, k: (k, n)),   # weight slice
                pl.BlockSpec((3, tn), lambda n, k: (0, n)),    # bias/gamma/beta
            ],
            out_specs=pl.BlockSpec((Bp, tn), lambda n, k: (0, n)),
            scratch_shapes=[pltpu.VMEM((Bp, tn), jnp.float32)],
        ),
        compiler_params=pltpu.CompilerParams(
            dimension_semantics=("parallel", "arbitrary"),
            vmem_limit_bytes=vmem_limit,
        ),
    )(x, w, p)


# ----------------------------------------------------------------------------
# Parameter init (PyTorch defaults) and packing to the kernel layout
# ----------------------------------------------------------------------------
def init_params(key, nin, nh, nout):
    """PyTorch default Linear init: U(-1/sqrt(fan_in), +1/sqrt(fan_in)).
    Weights stored transposed ((in, out)) so the kernel does x @ W.
    BN gamma=1, beta=0 (fresh module)."""
    ks = jax.random.split(key, 6)

    def lin(kw, kb, fan_in, fan_out):
        bound = 1.0 / jnp.sqrt(jnp.float32(fan_in))
        w = jax.random.uniform(kw, (fan_in, fan_out), jnp.float32, -bound, bound)
        b = jax.random.uniform(kb, (1, fan_out), jnp.float32, -bound, bound)
        return w, b

    w1, b1 = lin(ks[0], ks[1], nin, nh)
    w2, b2 = lin(ks[2], ks[3], nh, nh)
    w3, b3 = lin(ks[4], ks[5], nh, nout)
    return dict(
        w1=w1, b1=b1, g1=jnp.ones((1, nh), jnp.float32), be1=jnp.zeros((1, nh), jnp.float32),
        w2=w2, b2=b2, g2=jnp.ones((1, nh), jnp.float32), be2=jnp.zeros((1, nh), jnp.float32),
        w3=w3, b3=b3,
    )


def pack_params(params):
    """Pad feature dims to multiples of 128, cast weights to bf16, and stack
    (bias, gamma, beta) into a single (3, N) f32 array per layer."""
    nin, nh = params["w1"].shape
    nout = params["w3"].shape[1]
    nin_p, nh_p, nout_p = (_round_up(d, 128) for d in (nin, nh, nout))

    def pad_w(w, kp, np_):
        out = jnp.zeros((kp, np_), jnp.bfloat16)
        return out.at[:w.shape[0], :w.shape[1]].set(w.astype(jnp.bfloat16))

    def pack_vecs(b, g, be, np_):
        p = jnp.zeros((3, np_), jnp.float32)
        p = p.at[0, :b.shape[-1]].set(b.reshape(-1))
        if g is not None:
            p = p.at[1, :g.shape[-1]].set(g.reshape(-1))
            p = p.at[2, :be.shape[-1]].set(be.reshape(-1))
        return p

    return dict(
        nin=nin, nh=nh, nout=nout,
        w1=pad_w(params["w1"], nin_p, nh_p),
        w2=pad_w(params["w2"], nh_p, nh_p),
        w3=pad_w(params["w3"], nh_p, nout_p),
        p1=pack_vecs(params["b1"], params["g1"], params["be1"], nh_p),
        p2=pack_vecs(params["b2"], params["g2"], params["be2"], nh_p),
        p3=pack_vecs(params["b3"], None, None, nout_p),
    )


# ----------------------------------------------------------------------------
# Forward pass
# ----------------------------------------------------------------------------
def net_forward(x_nchw, packed, *, unflatten=False, image_size=28, tile=512):
    B = x_nchw.shape[0]
    x = x_nchw.reshape(B, -1).astype(jnp.float32)      # nn.Flatten() (glue)
    nin = x.shape[1]
    assert nin == packed["nin"]

    # Pad batch to a sublane multiple (BN stats mask the padded rows).
    # For throughput, callers should use batches >= 128 rows; B is kept as-given
    # here because BatchNorm semantics are tied to the actual batch.
    Bp = _round_up(B, 8)
    nin_p = packed["w1"].shape[0]
    xp = jnp.zeros((Bp, nin_p), jnp.bfloat16).at[:B, :nin].set(x.astype(jnp.bfloat16))

    h = _fused_layer(xp, packed["w1"], packed["p1"], b_real=B, relu_bn=True,
                     out_dtype=jnp.bfloat16, tile=tile)
    h = _fused_layer(h, packed["w2"], packed["p2"], b_real=B, relu_bn=True,
                     out_dtype=jnp.bfloat16, tile=tile)
    o = _fused_layer(h, packed["w3"], packed["p3"], b_real=B, relu_bn=False,
                     out_dtype=jnp.float32, tile=tile)

    out = o[:B, :packed["nout"]]
    if unflatten:   # nn.Unflatten(1, (1, image_size, image_size)) -- glue reshape
        out = out.reshape(B, 1, image_size, image_size)
    return out


# ----------------------------------------------------------------------------
# Pure-JAX references
# ----------------------------------------------------------------------------
def net_forward_ref_bf16(x_nchw, params):
    """Reference with the SAME numerical recipe as the kernel (bf16 matmul
    inputs, f32 accumulation/elementwise, fused BN scale/shift)."""
    B = x_nchw.shape[0]
    h = x_nchw.reshape(B, -1).astype(jnp.float32)

    def layer(h, w, b, g, be, relu_bn):
        y = jnp.dot(h.astype(jnp.bfloat16), w.astype(jnp.bfloat16),
                    preferred_element_type=jnp.float32) + b
        if relu_bn:
            y = jnp.maximum(y, 0.0)
            mu = jnp.mean(y, axis=0, keepdims=True)
            ex2 = jnp.mean(y * y, axis=0, keepdims=True)
            var = ex2 - mu * mu
            scale = g * jax.lax.rsqrt(var + EPS)
            shift = be - mu * scale
            y = (y * scale + shift).astype(jnp.bfloat16).astype(jnp.float32)
        return y

    h = layer(h, params["w1"], params["b1"], params["g1"], params["be1"], True)
    h = layer(h, params["w2"], params["b2"], params["g2"], params["be2"], True)
    return layer(h, params["w3"], params["b3"], None, None, False)


def net_forward_ref_f32(x_nchw, params):
    """Full-precision reference (PyTorch training-mode forward)."""
    h = x_nchw.reshape(x_nchw.shape[0], -1).astype(jnp.float32)

    def bn(h, g, b):
        mu = jnp.mean(h, axis=0, keepdims=True)
        var = jnp.mean((h - mu) ** 2, axis=0, keepdims=True)
        return (h - mu) * jax.lax.rsqrt(var + EPS) * g + b

    h = jnp.maximum(h @ params["w1"] + params["b1"], 0.0)
    h = bn(h, params["g1"], params["be1"])
    h = jnp.maximum(h @ params["w2"] + params["b2"], 0.0)
    h = bn(h, params["g2"], params["be2"])
    return h @ params["w3"] + params["b3"]


# ----------------------------------------------------------------------------
if __name__ == "__main__":
    # Small shapes consistent with the module: batch=6 (not a multiple of 8, to
    # exercise the masked-BN path), 1x16x16 "images" -> nin=256, nh=384
    # (stand-in for 3000), nout=32.  tile=128 exercises multi-tile N/K grids.
    B, C, H, W = 6, 1, 16, 16
    nin, nh, nout = C * H * W, 384, 32

    key = jax.random.PRNGKey(0)
    kx, kp = jax.random.split(key)
    x = jax.random.normal(kx, (B, C, H, W), jnp.float32)

    params = init_params(kp, nin, nh, nout)
    packed = pack_params(params)

    out = net_forward(x, packed, tile=128)
    out = jax.block_until_ready(out)
    assert out.shape == (B, nout)

    # Strict check against a reference using the identical bf16/f32 recipe.
    ref = net_forward_ref_bf16(x, params)
    assert jnp.max(jnp.abs(out - ref)) < 2e-3, "mismatch vs matched-recipe reference"

    # Loose sanity check against the full-f32 PyTorch-equivalent forward
    # (difference is only the bf16 weight/activation quantization).
    ref32 = net_forward_ref_f32(x, params)
    assert jnp.max(jnp.abs(out - ref32)) < 0.3, "mismatch vs f32 reference"

    print("KERNEL_OK")
</pallas_src>

<mosaic_0001>
module attributes {stable_mosaic.version = 11 : i64} {
  func.func @_layer_kernel(%arg0: i32, %arg1: i32, %arg2: memref<8x128xbf16, #tpu.memory_space<vmem>>, %arg3: memref<128x128xbf16, #tpu.memory_space<vmem>>, %arg4: memref<3x128xf32, #tpu.memory_space<vmem>>, %arg5: memref<8x128xbf16, #tpu.memory_space<vmem>>, %arg6: memref<8x128xf32, #tpu.memory_space<vmem>>) attributes {dimension_semantics = [#tpu.dimension_semantics<parallel>, #tpu.dimension_semantics<arbitrary>], iteration_bounds = array<i64: 3, 2>, scalar_prefetch = 0 : i64, scratch_operands = 1 : i64, tpu.core_type = #tpu.core_type<tc>, window_params = [{transform_indices = @transform_0, window_bounds = array<i64: 8, 128>}, {transform_indices = @transform_1, window_bounds = array<i64: 128, 128>}, {transform_indices = @transform_2, window_bounds = array<i64: 3, 128>}, {transform_indices = @transform_3, window_bounds = array<i64: 8, 128>}]} {
    %c0_i32 = arith.constant 0 : i32
    %0 = arith.cmpi eq, %arg1, %c0_i32 : i32
    %1 = arith.extui %0 : i1 to i32
    %c0_i32_0 = arith.constant 0 : i32
    %2 = arith.cmpi ne, %1, %c0_i32_0 : i32
    scf.if %2 {
      %cst_9 = arith.constant 0.000000e+00 : f32
      %12 = vector.broadcast %cst_9 : f32 to vector<8x128xf32>
      %c0_10 = arith.constant 0 : index
      %c0_11 = arith.constant 0 : index
      %13 = vector.load %arg6[%c0_10, %c0_11] : memref<8x128xf32, #tpu.memory_space<vmem>>, vector<8x128xf32>
      tpu.vector_store %arg6[%c0_10, %c0_11], %12 {strides = array<i32>} : memref<8x128xf32, #tpu.memory_space<vmem>>, vector<8x128xf32>,
    } else {
    }
    %c0 = arith.constant 0 : index
    %c0_1 = arith.constant 0 : index
    %3 = vector.load %arg6[%c0, %c0_1] : memref<8x128xf32, #tpu.memory_space<vmem>>, vector<8x128xf32>
    %c0_2 = arith.constant 0 : index
    %c0_3 = arith.constant 0 : index
    %4 = vector.load %arg2[%c0_2, %c0_3] : memref<8x128xbf16, #tpu.memory_space<vmem>>, vector<8x128xbf16>
    %c0_4 = arith.constant 0 : index
    %c0_5 = arith.constant 0 : index
    %5 = vector.load %arg3[%c0_4, %c0_5] : memref<128x128xbf16, #tpu.memory_space<vmem>>, vector<128x128xbf16>
    %cst = arith.constant dense<0.000000e+00> : vector<8x128xf32>
    %6 = tpu.matmul %4, %5, %cst {dimension_numbers = #tpu.dot_dimension_numbers<[1], [0], [0], [1], [0, 0, 1, 1], [], []>} : vector<8x128xbf16>, vector<128x128xbf16>, vector<8x128xf32> -> vector<8x128xf32>
    %7 = arith.addf %3, %6 : vector<8x128xf32>
    %c0_6 = arith.constant 0 : index
    %c0_7 = arith.constant 0 : index
    %8 = vector.load %arg6[%c0_6, %c0_7] : memref<8x128xf32, #tpu.memory_space<vmem>>, vector<8x128xf32>
    tpu.vector_store %arg6[%c0_6, %c0_7], %7 {strides = array<i32>} : memref<8x128xf32, #tpu.memory_space<vmem>>, vector<8x128xf32>,
    %c1_i32 = arith.constant 1 : i32
    %9 = arith.cmpi eq, %arg1, %c1_i32 : i32
    %10 = arith.extui %9 : i1 to i32
    %c0_i32_8 = arith.constant 0 : i32
    %11 = arith.cmpi ne, %10, %c0_i32_8 : i32
    scf.if %11 {
      %c0_9 = arith.constant 0 : index
      %c0_10 = arith.constant 0 : index
      %12 = vector.load %arg4[%c0_9, %c0_10] : memref<3x128xf32, #tpu.memory_space<vmem>>, vector<3x128xf32>
      %c0_11 = arith.constant 0 : index
      %c0_12 = arith.constant 0 : index
      %13 = vector.load %arg6[%c0_11, %c0_12] : memref<8x128xf32, #tpu.memory_space<vmem>>, vector<8x128xf32>
      %14 = vector.extract_strided_slice %12 {offsets = [0, 0], sizes = [1, 128], strides = [1, 1]} : vector<3x128xf32> to vector<1x128xf32>
      %15 = vector.broadcast %14 : vector<1x128xf32> to vector<8x128xf32>
      %16 = arith.addf %13, %15 : vector<8x128xf32>
      %cst_13 = arith.constant 0.000000e+00 : f32
      %17 = vector.broadcast %cst_13 : f32 to vector<8x128xf32>
      %18 = arith.maximumf %16, %17 : vector<8x128xf32>
      %19 = tpu.iota {dimensions = array<i32: 0>} : vector<8x128xi32>
      %c6_i32 = arith.constant 6 : i32
      %20 = vector.broadcast %c6_i32 : i32 to vector<8x128xi32>
      %21 = arith.cmpi slt, %19, %20 : vector<8x128xi32>
      %22 = arith.extui %21 : vector<8x128xi1> to vector<8x128xi32>
      %23 = arith.sitofp %22 : vector<8x128xi32> to vector<8x128xf32>
      %24 = arith.mulf %18, %23 : vector<8x128xf32>
      %cst_14 = arith.constant dense<0.000000e+00> : vector<128xf32>
      %25 = vector.multi_reduction <add>, %24, %cst_14 [0] : vector<8x128xf32> to vector<128xf32>
      %26 = vector.shape_cast %25 : vector<128xf32> to vector<1x128xf32>
      %cst_15 = arith.constant 0.166666672 : f32
      %27 = vector.broadcast %cst_15 : f32 to vector<1x128xf32>
      %28 = arith.mulf %26, %27 : vector<1x128xf32>
      %29 = arith.mulf %24, %24 : vector<8x128xf32>
      %cst_16 = arith.constant dense<0.000000e+00> : vector<128xf32>
      %30 = vector.multi_reduction <add>, %29, %cst_16 [0] : vector<8x128xf32> to vector<128xf32>
      %31 = vector.shape_cast %30 : vector<128xf32> to vector<1x128xf32>
      %cst_17 = arith.constant 0.166666672 : f32
      %32 = vector.broadcast %cst_17 : f32 to vector<1x128xf32>
      %33 = arith.mulf %31, %32 : vector<1x128xf32>
      %34 = arith.mulf %28, %28 : vector<1x128xf32>
      %35 = arith.subf %33, %34 : vector<1x128xf32>
      %36 = vector.extract_strided_slice %12 {offsets = [1, 0], sizes = [1, 128], strides = [1, 1]} : vector<3x128xf32> to vector<1x128xf32>
      %cst_18 = arith.constant 9.99999974E-6 : f32
      %37 = vector.broadcast %cst_18 : f32 to vector<1x128xf32>
      %38 = arith.addf %35, %37 : vector<1x128xf32>
      %39 = math.rsqrt %38 : vector<1x128xf32>
      %40 = arith.mulf %36, %39 : vector<1x128xf32>
      %41 = vector.extract_strided_slice %12 {offsets = [2, 0], sizes = [1, 128], strides = [1, 1]} : vector<3x128xf32> to vector<1x128xf32>
      %42 = arith.mulf %28, %40 : vector<1x128xf32>
      %43 = arith.subf %41, %42 : vector<1x128xf32>
      %44 = vector.broadcast %40 : vector<1x128xf32> to vector<8x128xf32>
      %45 = arith.mulf %18, %44 : vector<8x128xf32>
      %46 = vector.broadcast %43 : vector<1x128xf32> to vector<8x128xf32>
      %47 = arith.addf %45, %46 : vector<8x128xf32>
      %48 = arith.truncf %47 : vector<8x128xf32> to vector<8x128xbf16>
      %c0_19 = arith.constant 0 : index
      %c0_20 = arith.constant 0 : index
      %49 = vector.load %arg5[%c0_19, %c0_20] : memref<8x128xbf16, #tpu.memory_space<vmem>>, vector<8x128xbf16>
      tpu.vector_store %arg5[%c0_19, %c0_20], %48 {strides = array<i32>} : memref<8x128xbf16, #tpu.memory_space<vmem>>, vector<8x128xbf16>,
    } else {
    }
    return
  }
  func.func @transform_0(%arg0: i32, %arg1: i32) -> (i32, i32) {
    %c0_i32 = arith.constant 0 : i32
    %c0_i32_0 = arith.constant 0 : i32
    return %c0_i32, %arg1 : i32, i32
  }
  func.func @transform_1(%arg0: i32, %arg1: i32) -> (i32, i32) {
    %c0_i32 = arith.constant 0 : i32
    return %arg1, %arg0 : i32, i32
  }
  func.func @transform_2(%arg0: i32, %arg1: i32) -> (i32, i32) {
    %c0_i32 = arith.constant 0 : i32
    %c0_i32_0 = arith.constant 0 : i32
    return %c0_i32, %arg0 : i32, i32
  }
  func.func @transform_3(%arg0: i32, %arg1: i32) -> (i32, i32) {
    %c0_i32 = arith.constant 0 : i32
    %c0_i32_0 = arith.constant 0 : i32
    return %c0_i32, %arg0 : i32, i32
  }
}

</mosaic_0001>

<bundles_post_ra>
// kernel: tpu_custom_call.1
= control target key start
LH: loop header
LB: loop body
LE: loop exit
PB: predicated region body
PF: predicated region fallthrough
CT: control target
= control target key end

     0   :  { %s1490_s0 = inlined_call_operand.hbm [shape: bf16[8,256], index: 0, kind: input, shape index: {}]   ;;  %s1491_s1 = inlined_call_operand.hbm [shape: bf16[256,384], index: 1, kind: input, shape index: {}]   ;;  %s1492_s2 = inlined_call_operand.hbm [shape: f32[3,384], index: 2, kind: input, shape index: {}]   ;;  %s1493_s3 = inlined_call_operand.hbm [shape: bf16[8,384], index: 3, kind: output, shape index: {}]  }
   0x1   :  { %1507 = sst [smem:[#allocation20_spill]] %s1490_s0 }
   0x2   :  { %1508 = sst [smem:[#allocation21_spill]] %s1491_s1 }
   0x3   :  { %1509 = sst [smem:[#allocation22_spill]] %s1493_s3 }
   0x4   :  { %8 = vsyncpa [#allocation4], 0 }
   0x5   :  { %10 = vsyncpa [#allocation4 + $0x1], 0 }
   0x6   :  { %11 = vsyncpa [#allocation7], 0 }
   0x7   :  { %13 = vsyncpa [#allocation7 + $0x1], 0 }
   0x8   :  { %14 = vsyncpa [#allocation5], 0 }
   0x9   :  { %16 = vsyncpa [#allocation5 + $0x1], 0  ;;  %s1078_s12 = smov 0   ;;  %s1080_s13 = smov 0  }
   0xa   :  { %s1082_s14 = smov 0   ;;  %s1084_s15 = smov 0  }
   0xb   :  { %s1086_s16 = smov 0   ;;  %s1088_s17 = smov 0  }
   0xc   :  { %s1090_s18 = smov 0   ;;  %s1092_s19 = smov 0  }
   0xd   :  { %s1094_s20 = smov 0   ;;  %s1096_s21 = smov 0  }
   0xe   :  { %s1098_s22 = smov 0   ;;  %s1100_s23 = smov 0  }
   0xf   :  { %s1102_s24 = smov 0   ;;  %s1104_s25 = smov 0  }
  0x10 LB: > { %1510 = sst [smem:[#allocation14_spill]] %s1029_s21  ;;  %s34_s26 = sadd.s32 1, %s1041_s24  ;;  %s1045_s25 = sphi %s1104_s25, %s22_s25   ;;  %s1041_s24 = sphi %s1102_s24, %s1548_s24   ;;  %s1037_s23 = sphi %s1100_s23, %s1560_s23   ;;  %s1033_s22 = sphi %s1098_s22, %s1559_s22   ;;  %s1029_s21 = sphi %s1096_s21, %s1558_s21   ;;  %s1025_s20 = sphi %s1094_s20, %s1557_s20   ;;  %s1021_s19 = sphi %s1092_s19, %s1556_s19   ;;  %s1017_s18 = sphi %s1090_s18, %s1555_s18   ;;  %s1013_s17 = sphi %s1088_s17, %s1554_s17   ;;  %s1009_s16 = sphi %s1086_s16, %s1553_s16   ;;  %s1005_s15 = sphi %s1084_s15, %s1552_s15   ;;  %s1001_s14 = sphi %s1082_s14, %s1551_s14   ;;  %s997_s13 = sphi %s1080_s13, %s1550_s13   ;;  %s993_s12 = sphi %s1078_s12, %s1549_s12  }
  0x11   : > { %1511 = sst [smem:[#allocation15_spill]] %s1033_s22  ;;  %p1501_p0 = scmp.eq.s32.totalorder %s1045_s25, 0 }
  0x12   : > { %1512 = sst [smem:[#allocation16_spill]] %s1041_s24  ;;  %p76_p1 = scmp.ne.s32.totalorder %s1013_s17, %s1009_s16 }
  0x13   : > { %p1494_p4 = scmp.lt.s32.totalorder %s1045_s25, 6  ;;  %s176_s28 = sand.u32 1, %s1045_s25  }
  0x14   : > { %p78_p3 = por %p76_p1, %p1501_p0  ;;  %s178_s29 = sand.u32 1, %s1013_s17  }
  0x15   : > { %s592_s30 = sshll.u32 %s178_s29, 6  ;;  %s647_s4 = smul.u32 48, %s1037_s23 }
  0x16   : > { %s180_s5 = scalar_lea.vmem [#allocation6], %s592_s30  ;;  %p1163_p5 = pnand %p1494_p4, %p78_p3 }
  0x17   : > { %s189_s6 = sshll.u32 %s180_s5, 4  ;;  %s186_s8 = sadd.s32 %s1041_s24, %s647_s4  ;;  %s1168_s6 = int_to_ptr.vmem [resolvable:$true] %s189_s6 }
  0x18   : > { %s595_s9 = sshll.u32 %s186_s8, 6  ;;  %s1514_s1 = sld [smem:[#allocation21_spill]] }
  0x19   : > { %s1175_s29 = scalar_lea.sflag [#allocation7], %s176_s28  ;;  %p803_p7 = pneg %p1163_p5 }
  0x1e   : > { %s1173_s27 = scalar_lea.hbm %s1514_s1, %s595_s9  ;;  %s806_s8 = scalar_lea.hbm %s1514_s1, 6144 }
  0x1f   : > { %s801_s30 = scalar_lea.hbm %s1173_s27, 1024  ;;  %p807_p10 = scmp.lt.u32.totalorder %s1173_s27, %s1514_s1 }
  0x20   : > { %p802_p6 = scmp.ne.s32.totalorder %s1173_s27, %s801_s30  ;;  %p808_p11 = scmp.lt.u32.totalorder %s806_s8, %s801_s30 }
  0x21   : > { %p810_p13 = scmp.lt.u32.totalorder %s801_s30, %s1173_s27 }
  0x22   : > { %p804_p8 = pnand %p803_p7, %p802_p6  ;;  %p809_p12 = por %p808_p11, %p807_p10 }
  0x24   : > { %p805_p9 = pneg %p804_p8  ;;  %p811_p1 = por %p810_p13, %p809_p12 }
  0x26   : > { %p812_p3 = pnand %p811_p1, %p805_p9 }
  0x28   : > { %815 = shalt.err (!%p812_p3)
}
  0x29   : > { %s816_s28 = scalar_lea.vmem %s1168_s6, 1024  ;;  %s1047_s11 = smov [#allocation6]  }
  0x2a   : > { %p817_p6 = scmp.ne.s32.totalorder %s1168_s6, %s816_s28  ;;  %s821_s4 = sshll.u32 %s1047_s11, 4  ;;  %s822_s4 = int_to_ptr.vmem [resolvable:$false] %s821_s4 }
  0x2b   : > { %s823_s5 = scalar_lea.vmem %s822_s4, 2048  ;;  %p824_p2 = scmp.lt.s32.totalorder %s1168_s6, %s822_s4 }
  0x2c   : > { %p819_p8 = pnand %p817_p6, %p803_p7  ;;  %p825_p10 = scmp.lt.s32.totalorder %s823_s5, %s816_s28 }
  0x2e   : > { %p820_p4 = pneg %p819_p8  ;;  %p826_p11 = por %p825_p10, %p824_p2 }
  0x30   : > { %p827_p12 = pnand %p826_p11, %p820_p4 }
  0x32   : > { %830 = shalt.err (!%p827_p12)
}
  0x33   : > { %s1048_s30 = smov 192   ;;  %s1049_s8 = smov 64  }
  0x34   : > { %s1050_s9 = smov 4   ;;  %p598_p2 = scmp.ge.s32.totalorder %s1045_s25, 1 }
  0x35   : > { %662 = dma.hbm_to_vmem [thread:$0]  (!%p1163_p5), %s1173_s27, 1024, %s1168_s6, %s1175_s29, %s1048_s30, %s1049_s8, %s1050_s9  }
  0x36   : > { %p215_p4 = scmp.lt.s32.totalorder %s1045_s25, 7  ;;  %s1210_s28 = sadd.s32 4294967295, %s1045_s25  }
  0x37   : > { %s31_s11 = sadd.s32 1, %s1037_s23  ;;  %s41_s4 = sadd.s32 1, %s1025_s20 }
  0x38   : > { %p1205_p7 = pnand %p598_p2, %p215_p4  ;;  %p32_p9 = scmp.ge.s32.totalorder %s31_s11, 2 }
  0x39   : > { %p48_p5 = scmp.ne.s32.totalorder %s1025_s20, %s1021_s19  ;;  %p54_p13 = scmp.ne.s32.totalorder %s1021_s19, %s1017_s18 }
  0x3a   : > { %s1515_s10 = scalar_select %p1205_p7, 1, 0 }
  0x3b   : > { %p1500_p1 = scmp.eq.s32.totalorder %s1210_s28, 0  ;;  %s1562_s11 = smov (%p32_p9, %s31_s11), 0 }
  0x3c   : > { %1516 = sst [smem:[#allocation17_spill]] %s1562_s11  ;;  %s1564_s26 = smov (!%p32_p9, %s34_s26), %s1041_s24 }
  0x3d   : > { %s38_s27 = ssub.s32 %s1037_s23, %s1562_s11  ;;  %p1228_p3 = por %p1501_p0, %p48_p5 }
  0x3e   : > { %p36_p6 = scmp.ge.s32.totalorder %s1564_s26, 3  ;;  %p39_p8 = scmp.eq.s32.totalorder %s38_s27, 0 }
  0x3f   : > { %p1234_p10 = por %p1500_p1, %p54_p13  ;;  %p1519_p11 = scmp.ne.s32.totalorder %s1009_s16, %s1005_s15 }
  0x40   : > { %s1566_s26 = smov (%p36_p6, %s1564_s26), 0  ;;  %s158_s8 = sand.u32 1, %s1025_s20  }
  0x41   : > { %s1518_s18 = scalar_select %p1234_p10, 1, 0 }
  0x42   : > { %p1243_p12 = por %p1519_p11, %p1500_p1  ;;  %1522 = sst [smem:[#allocation19_spill]] %s1566_s26 }
  0x43   : > { %s1250_s5 = scalar_select %p39_p8, %s1025_s20, %s41_s4  }
  0x44   : > { %s1520_s7 = scalar_select %p1243_p12, 1, 0 }
  0x45   : > { %s1254_s30 = ssub.s32 %s1041_s24, %s1566_s26  ;;  %s590_s1 = sshll.u32 %s158_s8, 2 }
  0x46   : > { %1521 = sst [smem:[#allocation18_spill]] %s1520_s7  ;;  %s66_s9 = sor.u32 %s1254_s30, %s38_s27 }
  0x47   : > { %p67_p2 = scmp.eq.s32.totalorder %s66_s9, 0  ;;  %s591_s11 = sshll.u32 %s1037_s23, 6 }
  0x48   : > { %s1523_s3 = sadd.s32 1, %s1013_s17  ;;  %s1524_s0 = sld [smem:[#allocation20_spill]] }
  0x49   : > { %s1262_s22 = scalar_select %p67_p2, %s1013_s17, %s1523_s3  }
  0x4a   : > { %s162_s4 = scalar_lea.vmem [#allocation3], %s590_s1  ;;  %p1525_p4 = scmp.lt.s32.totalorder %s1045_s25, 6 }
  0x4b   : > { %s169_s26 = sshll.u32 %s162_s4, 4  ;;  %s159_s3 = scalar_lea.sflag [#allocation4], %s158_s8  ;;  %s1269_s26 = int_to_ptr.vmem [resolvable:$true] %s169_s26 }
  0x4c   : > { %p1275_p9 = pnand %p1525_p4, %p1228_p3 }
  0x4e   : > { %s1267_s7 = scalar_lea.hbm %s1524_s0, %s591_s11  ;;  %p833_p13 = pneg %p1275_p9 }
  0x4f   : > { %s831_s21 = scalar_lea.hbm %s1267_s7, 64  ;;  %s836_s6 = scalar_lea.hbm %s1524_s0, 128 }
  0x50   : > { %p832_p5 = scmp.ne.s32.totalorder %s1267_s7, %s831_s21  ;;  %p837_p3 = scmp.lt.u32.totalorder %s1267_s7, %s1524_s0 }
  0x51   : > { %p838_p11 = scmp.lt.u32.totalorder %s836_s6, %s831_s21  ;;  %p840_p4 = scmp.lt.u32.totalorder %s831_s21, %s1267_s7 }
  0x52   : > { %p834_p6 = pnand %p833_p13, %p832_p5 }
  0x53   : > { %p839_p2 = por %p838_p11, %p837_p3 }
  0x54   : > { %p835_p8 = pneg %p834_p6 }
  0x55   : > { %p841_p1 = por %p840_p4, %p839_p2 }
  0x57   : > { %p842_p0 = pnand %p841_p1, %p835_p8 }
  0x59   : > { %845 = shalt.err (!%p842_p0)
}
  0x5a   : > { %s846_s8 = scalar_lea.vmem %s1269_s26, 64  ;;  %s1051_s4 = smov [#allocation3]  }
  0x5b   : > { %p847_p5 = scmp.ne.s32.totalorder %s1269_s26, %s846_s8  ;;  %s851_s1 = sshll.u32 %s1051_s4, 4  ;;  %s852_s1 = int_to_ptr.vmem [resolvable:$false] %s851_s1 }
  0x5c   : > { %s853_s11 = scalar_lea.vmem %s852_s1, 128  ;;  %p854_p10 = scmp.lt.s32.totalorder %s1269_s26, %s852_s1 }
  0x5d   : > { %p849_p6 = pnand %p847_p5, %p833_p13  ;;  %p855_p3 = scmp.lt.s32.totalorder %s853_s11, %s846_s8 }
  0x5f   : > { %p850_p12 = pneg %p849_p6  ;;  %p856_p11 = por %p855_p3, %p854_p10 }
  0x61   : > { %p857_p2 = pnand %p856_p11, %p850_p12 }
  0x63   : > { %860 = shalt.err (!%p857_p2)
}
  0x64   : > { %659 = dma.hbm_to_vmem [thread:$0]  (!%p1275_p9), %s1267_s7, 64, %s1269_s26, %s159_s3  }
  0x65   : > { %s587_s21 = sadd.s32 4294967294, %s1045_s25   ;;  %p93_p0 = scmp.eq.s32.totalorder %s1254_s30, 0 }
  0x66   : > { %s95_s27 = sadd.s32 1, %s1001_s14  ;;  %p102_p1 = scmp.ne.s32.totalorder %s1001_s14, %s997_s13 }
  0x67   : > { %p108_p10 = scmp.ne.s32.totalorder %s997_s13, %s993_s12  ;;  %p1527_p12 = scmp.eq.s32.totalorder %s1045_s25, 0 }
  0x68   : > { %s1312_s6 = scalar_select %p93_p0, %s1001_s14, %s95_s27  }
  0x69   : > { %p104_p13 = por %p102_p1, %p1527_p12  ;;  %p1528_p8 = scmp.eq.s32.totalorder %s1210_s28, 0 }
  0x6a   : > { %p132_p5 = scmp.eq.s32.totalorder %s1210_s28, 5  ;;  %p138_p6 = scmp.eq.s32.totalorder %s587_s21, 5 }
  0x6b   : > { %p1318_p4 = por %p108_p10, %p1528_p8  ;;  %s201_s15 = sand.u32 1, %s1001_s14  }
  0x6c   : > { %s597_s8 = sshll.u32 %s1041_s24, 6  ;;  %p1325_p9 = por %p132_p5, %p102_p1 }
  0x6d   : > { %s1529_s9 = scalar_select %p1318_p4, 1, 0 }
  0x6e   : > { %s1530_s26 = scalar_select %p1325_p9, 1, 0 }
  0x6f   : > { %p1329_p3 = por %p138_p6, %p108_p10  ;;  %s596_s30 = sshll.u32 %s201_s15, 2 }
  0x70   : > { %s1336_s1 = scalar_lea.hbm %s1492_s2, %s597_s8  ;;  %p1532_p11 = scmp.lt.s32.totalorder %s1045_s25, 6 }
  0x71   : > { %s1531_s7 = scalar_select %p1329_p3, 1, 0 }
  0x72   : > { %p1340_p2 = pnand %p1532_p11, %p104_p13  ;;  %s203_s21 = scalar_lea.vmem [#allocation8], %s596_s30 }
  0x73   : > { %s210_s27 = sshll.u32 %s203_s21, 4  ;;  %s861_s15 = scalar_lea.hbm %s1336_s1, 64  ;;  %s211_s27 = int_to_ptr.vmem [resolvable:$true] %s210_s27 }
  0x74   : > { %p862_p0 = scmp.ne.s32.totalorder %s1336_s1, %s861_s15  ;;  %p863_p1 = pneg %p1340_p2 }
  0x75   : > { %s866_s4 = scalar_lea.hbm %s1492_s2, 192  ;;  %p867_p13 = scmp.lt.u32.totalorder %s1336_s1, %s1492_s2 }
  0x76   : > { %p864_p10 = pnand %p863_p1, %p862_p0  ;;  %p868_p8 = scmp.lt.u32.totalorder %s866_s4, %s861_s15 }
  0x77   : > { %p870_p6 = scmp.lt.u32.totalorder %s861_s15, %s1336_s1 }
  0x78   : > { %p865_p12 = pneg %p864_p10  ;;  %p869_p5 = por %p868_p8, %p867_p13 }
  0x7a   : > { %p871_p11 = por %p870_p6, %p869_p5 }
  0x7c   : > { %p872_p3 = pnand %p871_p11, %p865_p12 }
  0x7e   : > { %875 = shalt.err (!%p872_p3)
}
  0x7f   : > { %s876_s30 = scalar_lea.vmem %s211_s27, 64  ;;  %s1052_s21 = smov [#allocation8]  }
  0x80   : > { %p877_p9 = scmp.ne.s32.totalorder %s211_s27, %s876_s30  ;;  %s881_s8 = sshll.u32 %s1052_s21, 4  ;;  %s882_s8 = int_to_ptr.vmem [resolvable:$false] %s881_s8 }
  0x81   : > { %s883_s3 = scalar_lea.vmem %s882_s8, 128  ;;  %p884_p4 = scmp.lt.s32.totalorder %s211_s27, %s882_s8 }
  0x82   : > { %p879_p0 = pnand %p877_p9, %p863_p1  ;;  %p885_p7 = scmp.lt.s32.totalorder %s883_s3, %s876_s30 }
  0x84   : > { %p880_p10 = pneg %p879_p0  ;;  %p886_p8 = por %p885_p7, %p884_p4 }
  0x86   : > { %p887_p13 = pnand %p886_p8, %p880_p10 }
  0x88   : > { %890 = shalt.err (!%p887_p13)
}
  0x89   : > { %665 = dma.hbm_to_vmem [thread:$0]  (!%p1340_p2), %s1336_s1, 64, %s211_s27, %s1175_s29  }
  0x8a   : > { %p1534_p3 = scmp.ne.s32.totalorder %s1515_s10, 0 }
  0x8b   : > { %s221_s0 = sand.u32 (!%p1534_p3), 1, %s1021_s19   ;;  %p1535_p9 = scmp.ne.s32.totalorder (!%p1534_p3), %s1518_s18, 0 }
  0x8c   : > { %219 = sbr.rel (%p1534_p3) target bundleno = 510 (0x1fe), region = 32  ;;  %s1369_s24 = sshll.u32 (!%p1534_p3), %s221_s0, 2 }
  0x8d   : > { %s222_s15 = scalar_lea.sflag (!%p1534_p3), [#allocation4], %s221_s0  ;;  %s225_s4 = scalar_lea.vmem (!%p1534_p3), [#allocation3], %s1369_s24 }
  0x93   : > { %976 = dma.done.wait (%p1535_p9), %s222_s15, 64  }
  0x94   : > { %978 = vsyncadd (%p1535_p9), %s222_s15, 4294967232  ;;  %s1536_s11 = sld [smem:[#allocation18_spill]]  ;;  %s230_s29 = sand.u32 1, %s1210_s28  }
  0x95   : > { %s232_s1 = sand.u32 1, %s1009_s16   ;;  %s231_s27 = scalar_lea.sflag [#allocation7], %s230_s29 }
  0x96   : > { %s600_s10 = sshll.u32 %s232_s1, 6 }
  0x97   : > { %s1378_s30 = scalar_lea.vmem [#allocation6], %s600_s10 }
  0x9a   : > { %p1537_p7 = scmp.ne.s32.totalorder %s1536_s11, 0 }
  0x9c   : > { %980 = dma.done.wait (%p1537_p7), %s231_s27, 1024  }
  0x9d   : > { %982 = vsyncadd (%p1537_p7), %s231_s27, 4294966272  ;;  %s241_s21 = sand.u32 1, %s997_s13   ;;  %p1538_p4 = scmp.ne.s32.totalorder %s1529_s9, 0 }
  0x9e   : > { %s1387_s18 = sshll.u32 %s241_s21, 2 }
  0x9f   : > { %s243_s8 = scalar_lea.vmem [#allocation8], %s1387_s18 }
  0xa0   : > { %984 = dma.done.wait (%p1538_p4), %s231_s27, 64  }
  0xa1   : > { %986 = vsyncadd (%p1538_p4), %s231_s27, 4294967232  ;;  %s275_s28 = scalar_lea.vmem [#allocation9], %s1387_s18  ;;  %s1539_s3 = sld [smem:[#allocation14_spill]] }
  0xa7   : > { %p603_p2 = scmp.ne.s32.totalorder %s1539_s3, 0 }
  0xa8   : > { %v1053_v0 = vmov (!%p603_p2), 0.0  }
  0xa9   : > { %281 = sbr.rel (%p603_p2) target bundleno = 176 (0xb0), region = 48  ;;  %282 = vst [vmem:[#allocation2] sm:$0xff] (!%p603_p2), %v1053_v0 }
  0xb0 PF: > { %v791_v1 = vld [vmem:[%s1378_s30] sm:$0xff]   ;;  %v1054_v2 = vmov 0.0   ;;  %v792_v3 = vld [vmem:[%s1378_s30 + $0x8] sm:$0xff]   ;;  %vm1055_vm0 = vmmov 0   ;;  %v793_v4 = vld [vmem:[%s1378_s30 + $0x10] sm:$0xff]   ;;  %s1540_s9 = sld [smem:[#allocation14_spill]] }
  0xb1   : > { %627 = vmatprep.subr.bf16.mxu0 %v1054_v2  ;;  %643 = vmatprep.mubr.msk.bf16.mxu0 %vm1055_vm0, %v1054_v2  ;;  %v794_v5 = vld [vmem:[%s1378_s30 + $0x18] sm:$0xff]   ;;  %v795_v6 = vld [vmem:[%s1378_s30 + $0x20] sm:$0xff]   ;;  %v796_v7 = vld [vmem:[%s1378_s30 + $0x28] sm:$0xff]  }
  0xb2   : > { %628 = vmatpush3.bf16.msra.mxu0 %v791_v1  ;;  %v797_v8 = vld [vmem:[%s1378_s30 + $0x30] sm:$0xff]   ;;  %v798_v9 = vld [vmem:[%s1378_s30 + $0x38] sm:$0xff]  }
  0xb3   : > { %629 = vmatprep.subr.bf16.mxu0 %v1054_v2  ;;  %v284_v10 = vld [vmem:[%s225_s4] sm:$0xf]  ;;  %v283_v11 = vld [vmem:[#allocation2] sm:$0xff] }
  0xb6   : > { %630 = vmatpush3.bf16.msra.mxu0 %v792_v3  ;;  %p612_p1 = scmp.ne.s32.totalorder %s1540_s9, 1 }
  0xb7   : > { %631 = vmatprep.subr.bf16.mxu0 %v1054_v2  ;;  %v397_v17 = vlaneseq (!%p612_p1)  ;;  %v395_v19 = vld [vmem:[%s243_s8] sm:$0x7] (!%p612_p1)  ;;  %v1056_v24 = vmov (!%p612_p1), 0.0  }
  0xb9   : > { %v398_v18 = vshrl.u32 (!%p612_p1), %v397_v17, 7 }
  0xba   : > { %632 = vmatpush3.bf16.msra.mxu0 %v793_v4 }
  0xbb   : > { %633 = vmatprep.subr.bf16.mxu0 %v1054_v2  ;;  %v399_v20 = vsub.s32 (!%p612_p1), 0, %v398_v18  ;;  %vm405_vm1 = vcmp.lt.s32.totalorder (!%p612_p1), %v398_v18, 6  ;;  %v436_v46 = vsub.s32 (!%p612_p1), 1, %v398_v18  ;;  %v441_v52 = vsub.s32 (!%p612_p1), 2, %v398_v18 }
  0xbc   : > { %v613_v25 = vsel (!%p612_p1), %vm405_vm1, 1.0, %v1056_v24 }
  0xbd   : > { %v400_v22 = vrot.slane (!%p612_p1), %v395_v19, %v399_v20 }
  0xbe   : > { %634 = vmatpush3.bf16.msra.mxu0 %v794_v5 }
  0xbf   : > { %635 = vmatprep.subr.bf16.mxu0 %v1054_v2 }
  0xc2   : > { %636 = vmatpush3.bf16.msra.mxu0 %v795_v6 }
  0xc3   : > { %637 = vmatprep.subr.bf16.mxu0 %v1054_v2 }
  0xc6   : > { %638 = vmatpush3.bf16.msra.mxu0 %v796_v7 }
  0xc7   : > { %639 = vmatprep.subr.bf16.mxu0 %v1054_v2 }
  0xca   : > { %640 = vmatpush3.bf16.msra.mxu0 %v797_v8 }
  0xcb   : > { %641 = vmatprep.subr.bf16.mxu0 %v1054_v2 }
  0xce   : > { %642 = vmatpush3.bf16.msra.mxu0 %v798_v9 }
  0xd1   : > { %644 = vmatmul.mubr.bf16.vlgmr.msra.gmra.mrb[0].mxu0 %v284_v10 }
 0x1a1   : > { %394 = sbr.rel (%p612_p1) target bundleno = 483 (0x1e3), region = 52 }
 0x1a4   : > { %v383_v12 = vpop.f32.mrb[0].mxu0 }
 0x1a5   : > { %v389_v13 = vadd.f32 %v383_v12, %v283_v11  ;;  %v645_v14 = vpop.f32.mrb[1].mxu0 }
 0x1a6   : > { %v386_v15 = vpop.f32.mrb[2].mxu0 }
 0x1a7   : > { %390 = vst [vmem:[#allocation2] sm:$0xff] %v389_v13  ;;  %v646_v16 = vpop.f32.mrb[3].mxu0 }
 0x1ae   : > { %v396_v21 = vld [vmem:[#allocation2] sm:$0xff] }
 0x1af   : > { %v401_v23 = vadd.f32 %v400_v22, %v396_v21 }
 0x1b1   : > { %v402_v26 = vmax.f32 %v401_v23, 0.0 }
 0x1b3   : > { %v408_v27 = vmul.f32 %v613_v25, %v402_v26 }
 0x1b5   : > { %v409_v28 = vrot.slane %v408_v27, 4  ;;  %v416_v29 = vmul.f32 %v408_v27, %v408_v27 }
 0x1b7   : > { %v410_v30 = vadd.f32 %v409_v28, %v408_v27  ;;  %v417_v31 = vrot.slane %v416_v29, 4 }
 0x1b9   : > { %v411_v32 = vrot.slane %v410_v30, 2  ;;  %v418_v33 = vadd.f32 %v417_v31, %v416_v29 }
 0x1bb   : > { %v412_v34 = vadd.f32 %v411_v32, %v410_v30  ;;  %v419_v35 = vrot.slane %v418_v33, 2 }
 0x1bd   : > { %v413_v36 = vrot.slane %v412_v34, 1  ;;  %v420_v37 = vadd.f32 %v419_v35, %v418_v33 }
 0x1bf   : > { %v414_v38 = vadd.f32 %v413_v36, %v412_v34  ;;  %v421_v39 = vrot.slane %v420_v37, 1 }
 0x1c1   : > { %v415_v40 = vmul.f32 0.16666667, %v414_v38  ;;  %v422_v41 = vadd.f32 %v421_v39, %v420_v37 }
 0x1c3   : > { %v423_v42 = vmul.f32 0.16666667, %v422_v41  ;;  %v424_v43 = vmul.f32 %v415_v40, %v415_v40 }
 0x1c5   : > { %v425_v44 = vsub.f32 %v423_v42, %v424_v43 }
 0x1c7   : > { %v426_v45 = vadd.f32 1e-05, %v425_v44 }
 0x1c9   : > { %799 = vrsqrt.f32 %v426_v45 }
 0x1d3   : > { %v800_v47 = vpop.eup %799 }
 0x1d4   : > { %v428_v48 = vmul.f32 %v800_v47, %v395_v19 }
 0x1d6   : > { %v429_v49 = vmul.f32 %v428_v48, %v415_v40  ;;  %v437_v50 = vrot.slane %v428_v48, %v436_v46 }
 0x1d8   : > { %v431_v51 = vrot.slane %v429_v49, 7  ;;  %v438_v54 = vmul.f32 %v437_v50, %v402_v26 }
 0x1da   : > { %v433_v53 = vsub.f32 %v395_v19, %v431_v51 }
 0x1dc   : > { %v442_v55 = vrot.slane %v433_v53, %v441_v52 }
 0x1de   : > { %v443_v56 = vadd.f32 %v442_v55, %v438_v54 }
 0x1e0   : > { %v444_v57 = vpack.c.bf16 %v443_v56, %v443_v56 }
 0x1e2   : > { %445 = vst [vmem:[%s275_s28] sm:$0xf] %v444_v57 }
 0x1e3 PF: > { %s1541_s0 = sld [smem:[#allocation15_spill]]  ;;  %s1542_s11 = sld [smem:[#allocation22_spill]] }
 0x1e4   : > { %s460_s1 = sshll.u32 %s275_s28, 4  ;;  %s447_s10 = scalar_lea.sflag [#allocation5], %s241_s21  ;;  %s461_s1 = int_to_ptr.vmem [resolvable:$true] %s460_s1 }
 0x1e5   : > { %s891_s27 = scalar_lea.vmem %s461_s1, 64  ;;  %p1543_p5 = scmp.ne.s32.totalorder %s1530_s26, 0 }
 0x1e6   : > { %p892_p12 = scmp.ne.s32.totalorder %s461_s1, %s891_s27  ;;  %s1057_s30 = smov [#allocation9]  }
 0x1e7   : > { %s895_s8 = sshll.u32 %s1057_s30, 4  ;;  %s896_s8 = int_to_ptr.vmem [resolvable:$false] %s895_s8 }
 0x1e8   : > { %p893_p6 = pnand %p892_p12, %p1543_p5  ;;  %s897_s3 = scalar_lea.vmem %s896_s8, 128 }
 0x1e9   : > { %s615_s24 = sshll.u32 %s1541_s0, 6  ;;  %p898_p0 = scmp.lt.s32.totalorder %s461_s1, %s896_s8 }
 0x1ea   : > { %s1415_s29 = scalar_lea.hbm %s1542_s11, %s615_s24  ;;  %p894_p11 = pneg %p893_p6 }
 0x1eb   : > { %p899_p10 = scmp.lt.s32.totalorder %s897_s3, %s891_s27 }
 0x1ed   : > { %p900_p8 = por %p899_p10, %p898_p0 }
 0x1ef   : > { %p901_p13 = pnand %p900_p8, %p894_p11 }
 0x1f1   : > { %904 = shalt.err (!%p901_p13)
}
 0x1f2   : > { %s905_s21 = scalar_lea.hbm %s1415_s29, 64  ;;  %s909_s9 = scalar_lea.hbm %s1542_s11, 192 }
 0x1f3   : > { %p906_p3 = scmp.ne.s32.totalorder %s1415_s29, %s905_s21  ;;  %p910_p4 = scmp.lt.u32.totalorder %s1415_s29, %s1542_s11 }
 0x1f4   : > { %p911_p2 = scmp.lt.u32.totalorder %s909_s9, %s905_s21  ;;  %p913_p12 = scmp.lt.u32.totalorder %s905_s21, %s1415_s29 }
 0x1f5   : > { %p907_p9 = pnand %p906_p3, %p1543_p5 }
 0x1f6   : > { %p912_p1 = por %p911_p2, %p910_p4 }
 0x1f7   : > { %p908_p7 = pneg %p907_p9 }
 0x1f8   : > { %p914_p6 = por %p913_p12, %p912_p1 }
 0x1fa   : > { %p915_p11 = pnand %p914_p6, %p908_p7 }
 0x1fc   : > { %918 = shalt.err (!%p915_p11)
}
 0x1fd   : > { %654 = dma.vmem_to_hbm [thread:$0]  (%p1543_p5), %s461_s1, 64, %s1415_s29, %s447_s10  }
 0x1fe PF: > { %p671_p0 = scmp.ge.s32.totalorder %s1045_s25, 2  ;;  %s472_s15 = sand.u32 1, %s993_s12  }
 0x1ff   : > { %p1544_p10 = scmp.ne.s32.totalorder %s1531_s7, 0  ;;  %s473_s4 = scalar_lea.sflag [#allocation5], %s472_s15 }
 0x201   : > { %p667_p8 = pnand %p671_p0, %p1544_p10 }
 0x203   : > { %988 = dma.done.wait (!%p667_p8), %s473_s4, 64  }
 0x204   : > { %990 = vsyncadd (!%p667_p8), %s473_s4, 4294967232  ;;  %s22_s25 = sadd.s32 1, %s1045_s25   ;;  %s1546_s26 = sld [smem:[#allocation16_spill]] }
 0x205   : > { %p1443_p13 = scmp.ge.s32.totalorder %s22_s25, 8   ;;  %s1547_s7 = sld [smem:[#allocation17_spill]] }
 0x206   : > { %s1548_s24 = sld [smem:[#allocation19_spill]]  ;;  %s1549_s12 = smov %s997_s13 }
 0x207   : > { %s1550_s13 = smov %s1001_s14  ;;  %s1551_s14 = smov %s1312_s6 }
 0x208   : > { %s1552_s15 = smov %s1009_s16  ;;  %s1553_s16 = smov %s1013_s17 }
 0x209   : > { %s1554_s17 = smov %s1262_s22  ;;  %s1555_s18 = smov %s1021_s19 }
 0x20a   : > { %s1556_s19 = smov %s1025_s20  ;;  %s1557_s20 = smov %s1250_s5 }
 0x20b   : > { %s1558_s21 = smov %s1037_s23  ;;  %s1559_s22 = smov %s1546_s26 }
 0x20c   : > { %s1560_s23 = smov %s1547_s7  ;;  %21 = sbr.rel (!%p1443_p13) target bundleno = 16 (0x10), region = 109 }
 0x213   :  { %478 = vsyncpa [#allocation4], 1 }
 0x214   :  { %480 = vsyncpa [#allocation4 + $0x1], 1 }
 0x215   :  { %481 = vsyncpa [#allocation7], 1 }
 0x216   :  { %483 = vsyncpa [#allocation7 + $0x1], 1 }
 0x217   :  { %484 = vsyncpa [#allocation5], 1 }
 0x218   :  { %486 = vsyncpa [#allocation5 + $0x1], 1 }

</bundles_post_ra>
